<compile_context>
chip_gen: v7x
topology: tpu7x:2x2x1
jax: 0.10.0
libtpu: 0.0.40
codegen_flags: <defaults>
</compile_context>

<pallas_src>
import jax
import jax.numpy as jnp
from jax import lax
from jax.experimental import pallas as pl
from jax.experimental.pallas import tpu as pltpu


def _round_up(v, m):
    return (v + m - 1) // m * m


def _linear_kernel(x_ref, w_ref, b_ref, o_ref, acc_ref):
    """(TB, TK) x-tile  contracted with  (Cp, TK) weight-tile  ->  (TB, Cp).

    Contraction is over the K (feature) dim of BOTH operands, so the weight is
    consumed in its native nn.Linear (num_classes, input_size) layout — no
    transpose in the wrapper and no extra HBM pass over the weight.
    """
    k = pl.program_id(1)

    @pl.when(k == 0)
    def _():
        acc_ref[...] = jnp.zeros_like(acc_ref)

    acc_ref[...] += lax.dot_general(
        x_ref[...],
        w_ref[...],
        dimension_numbers=(((1,), (1,)), ((), ())),
        preferred_element_type=jnp.float32,
    )

    @pl.when(k == pl.num_programs(1) - 1)
    def _():
        o_ref[...] = (acc_ref[...] + b_ref[...]).astype(o_ref.dtype)


def one_layer_forward(x_nchw, weight, bias, *, tk_max=512):
    """Pallas equivalent of OneLayer.forward: out = flatten(x) @ W^T + b.

    x_nchw : (B, C, H, W) float32
    weight : (num_classes, input_size) float32  (PyTorch nn.Linear layout)
    bias   : (num_classes,) float32
    returns: (B, num_classes) float32
    """
    B = x_nchw.shape[0]
    x2d = x_nchw.reshape(B, -1)                # same semantics as .view(B, -1)
    D = x2d.shape[1]
    C = weight.shape[0]
    assert weight.shape[1] == D

    # ---- TPU-friendly tiling ------------------------------------------------
    # Sublane (second-minor) dims -> multiple of 8, lane (minor) dims -> 128.
    TB = 128 if B >= 128 else _round_up(B, 8)          # batch tile
    B_pad = _round_up(B, TB)
    C_pad = _round_up(C, 128)                          # lane-dense output/bias
    D_pad = _round_up(D, 128)
    # K tile: largest of (tk_max, 256, 128) dividing the padded feature dim;
    # kept modest (<=512 by default) so double-buffered tiles fit comfortably
    # in scoped VMEM on v5e (16 MiB) and v7x (half the VMEM of v6e).
    TK = next(c for c in (tk_max, 256, 128) if D_pad % c == 0)

    x_p = x2d
    if (B_pad, D_pad) != (B, D):
        x_p = jnp.pad(x2d, ((0, B_pad - B), (0, D_pad - D)))
    w_p = weight
    if (C_pad, D_pad) != (C, D):
        w_p = jnp.pad(weight, ((0, C_pad - C), (0, D_pad - D)))
    b_p = bias if C_pad == C else jnp.pad(bias, (0, C_pad - C))
    b_p = b_p.reshape(1, C_pad)

    grid = (B_pad // TB, D_pad // TK)                  # K axis last / innermost

    cost = pl.CostEstimate(
        flops=2 * B_pad * D_pad * C_pad,
        transcendentals=0,
        bytes_accessed=4 * (B_pad * D_pad + C_pad * D_pad + B_pad * C_pad),
    )

    out_p = pl.pallas_call(
        _linear_kernel,
        out_shape=jax.ShapeDtypeStruct((B_pad, C_pad), x2d.dtype),
        grid_spec=pltpu.PrefetchScalarGridSpec(
            num_scalar_prefetch=0,
            grid=grid,
            in_specs=[
                pl.BlockSpec((TB, TK), lambda b, k: (b, k)),      # x tile
                pl.BlockSpec((C_pad, TK), lambda b, k: (0, k)),   # weight tile
                pl.BlockSpec((1, C_pad), lambda b, k: (0, 0)),    # bias row
            ],
            # Output block stays resident across the K axis (accumulator).
            out_specs=pl.BlockSpec((TB, C_pad), lambda b, k: (b, 0)),
            scratch_shapes=[pltpu.VMEM((TB, C_pad), jnp.float32)],
        ),
        compiler_params=pltpu.CompilerParams(
            # Batch axis shards across v7x's 2 TensorCores; reduction stays serial.
            dimension_semantics=("parallel", "arbitrary"),
        ),
        cost_estimate=cost,
    )(x_p, w_p, b_p)

    return out_p[:B, :C]


if __name__ == "__main__":
    # Small shapes consistent with the module: x is (B, C, H, W), flattened
    # input_size = C*H*W, linear maps input_size -> num_classes.
    # D = 1024 with TK = 512 exercises the multi-step K accumulation path.
    B, C_in, H, W = 2, 4, 16, 16
    input_size = C_in * H * W       # 1024
    num_classes = 16

    key = jax.random.PRNGKey(0)
    kx, kw, kb = jax.random.split(key, 3)

    x = jax.random.normal(kx, (B, C_in, H, W), dtype=jnp.float32)

    # Deterministic parameter init mirroring nn.Linear's default
    # U(-1/sqrt(in_features), 1/sqrt(in_features)).
    bound = 1.0 / jnp.sqrt(jnp.float32(input_size))
    weight = jax.random.uniform(
        kw, (num_classes, input_size), minval=-bound, maxval=bound, dtype=jnp.float32
    )
    bias = jax.random.uniform(
        kb, (num_classes,), minval=-bound, maxval=bound, dtype=jnp.float32
    )

    out = jax.jit(one_layer_forward)(x, weight, bias)
    out = jax.block_until_ready(out)

    # Reference check in plain JAX (same math as the PyTorch forward).
    ref = x.reshape(B, -1) @ weight.T + bias
    assert out.shape == (B, num_classes)
    assert jnp.allclose(out, ref, atol=1e-5, rtol=1e-5)

    print("KERNEL_OK")
</pallas_src>

<mosaic_0001>
module attributes {stable_mosaic.version = 11 : i64} {
  func.func @_linear_kernel(%arg0: i32, %arg1: i32, %arg2: memref<8x512xf32, #tpu.memory_space<vmem>>, %arg3: memref<128x512xf32, #tpu.memory_space<vmem>>, %arg4: memref<1x128xf32, #tpu.memory_space<vmem>>, %arg5: memref<8x128xf32, #tpu.memory_space<vmem>>, %arg6: memref<8x128xf32, #tpu.memory_space<vmem>>) attributes {dimension_semantics = [#tpu.dimension_semantics<parallel>, #tpu.dimension_semantics<arbitrary>], iteration_bounds = array<i64: 1, 2>, scalar_prefetch = 0 : i64, scratch_operands = 1 : i64, tpu.core_type = #tpu.core_type<tc>, window_params = [{transform_indices = @transform_0, window_bounds = array<i64: 8, 512>}, {transform_indices = @transform_1, window_bounds = array<i64: 128, 512>}, {pipeline_mode = #tpu.pipeline_mode<synchronous>, transform_indices = @transform_2, window_bounds = array<i64: 1, 128>}, {transform_indices = @transform_3, window_bounds = array<i64: 8, 128>}]} {
    %c0_i32 = arith.constant 0 : i32
    %0 = arith.cmpi eq, %arg1, %c0_i32 : i32
    %1 = arith.extui %0 : i1 to i32
    %c0_i32_0 = arith.constant 0 : i32
    %2 = arith.cmpi ne, %1, %c0_i32_0 : i32
    scf.if %2 {
      %cst_9 = arith.constant 0.000000e+00 : f32
      %12 = vector.broadcast %cst_9 : f32 to vector<8x128xf32>
      %c0_10 = arith.constant 0 : index
      %c0_11 = arith.constant 0 : index
      %13 = vector.load %arg6[%c0_10, %c0_11] : memref<8x128xf32, #tpu.memory_space<vmem>>, vector<8x128xf32>
      tpu.vector_store %arg6[%c0_10, %c0_11], %12 {strides = array<i32>} : memref<8x128xf32, #tpu.memory_space<vmem>>, vector<8x128xf32>,
    } else {
    }
    %c0 = arith.constant 0 : index
    %c0_1 = arith.constant 0 : index
    %3 = vector.load %arg6[%c0, %c0_1] : memref<8x128xf32, #tpu.memory_space<vmem>>, vector<8x128xf32>
    %c0_2 = arith.constant 0 : index
    %c0_3 = arith.constant 0 : index
    %4 = vector.load %arg2[%c0_2, %c0_3] : memref<8x512xf32, #tpu.memory_space<vmem>>, vector<8x512xf32>
    %c0_4 = arith.constant 0 : index
    %c0_5 = arith.constant 0 : index
    %5 = vector.load %arg3[%c0_4, %c0_5] : memref<128x512xf32, #tpu.memory_space<vmem>>, vector<128x512xf32>
    %cst = arith.constant dense<0.000000e+00> : vector<8x128xf32>
    %6 = tpu.matmul %4, %5, %cst {dimension_numbers = #tpu.dot_dimension_numbers<[1], [1], [0], [0], [0, 0, 1, 0], [], []>} : vector<8x512xf32>, vector<128x512xf32>, vector<8x128xf32> -> vector<8x128xf32>
    %7 = arith.addf %3, %6 : vector<8x128xf32>
    %c0_6 = arith.constant 0 : index
    %c0_7 = arith.constant 0 : index
    %8 = vector.load %arg6[%c0_6, %c0_7] : memref<8x128xf32, #tpu.memory_space<vmem>>, vector<8x128xf32>
    tpu.vector_store %arg6[%c0_6, %c0_7], %7 {strides = array<i32>} : memref<8x128xf32, #tpu.memory_space<vmem>>, vector<8x128xf32>,
    %c1_i32 = arith.constant 1 : i32
    %9 = arith.cmpi eq, %arg1, %c1_i32 : i32
    %10 = arith.extui %9 : i1 to i32
    %c0_i32_8 = arith.constant 0 : i32
    %11 = arith.cmpi ne, %10, %c0_i32_8 : i32
    scf.if %11 {
      %c0_9 = arith.constant 0 : index
      %c0_10 = arith.constant 0 : index
      %12 = vector.load %arg6[%c0_9, %c0_10] : memref<8x128xf32, #tpu.memory_space<vmem>>, vector<8x128xf32>
      %c0_11 = arith.constant 0 : index
      %c0_12 = arith.constant 0 : index
      %13 = vector.load %arg4[%c0_11, %c0_12] : memref<1x128xf32, #tpu.memory_space<vmem>>, vector<1x128xf32>
      %14 = vector.broadcast %13 : vector<1x128xf32> to vector<8x128xf32>
      %15 = arith.addf %12, %14 : vector<8x128xf32>
      %c0_13 = arith.constant 0 : index
      %c0_14 = arith.constant 0 : index
      %16 = vector.load %arg5[%c0_13, %c0_14] : memref<8x128xf32, #tpu.memory_space<vmem>>, vector<8x128xf32>
      tpu.vector_store %arg5[%c0_13, %c0_14], %15 {strides = array<i32>} : memref<8x128xf32, #tpu.memory_space<vmem>>, vector<8x128xf32>,
    } else {
    }
    return
  }
  func.func @transform_0(%arg0: i32, %arg1: i32) -> (i32, i32) {
    %c0_i32 = arith.constant 0 : i32
    return %arg0, %arg1 : i32, i32
  }
  func.func @transform_1(%arg0: i32, %arg1: i32) -> (i32, i32) {
    %c0_i32 = arith.constant 0 : i32
    %c0_i32_0 = arith.constant 0 : i32
    return %c0_i32, %arg1 : i32, i32
  }
  func.func @transform_2(%arg0: i32, %arg1: i32) -> (i32, i32) {
    %c0_i32 = arith.constant 0 : i32
    %c0_i32_0 = arith.constant 0 : i32
    %c0_i32_1 = arith.constant 0 : i32
    return %c0_i32, %c0_i32_0 : i32, i32
  }
  func.func @transform_3(%arg0: i32, %arg1: i32) -> (i32, i32) {
    %c0_i32 = arith.constant 0 : i32
    %c0_i32_0 = arith.constant 0 : i32
    return %arg0, %c0_i32 : i32, i32
  }
}

</mosaic_0001>

<bundles_post_ra>
// kernel: one_layer_forward.1
= control target key start
LH: loop header
LB: loop body
LE: loop exit
PB: predicated region body
PF: predicated region fallthrough
CT: control target
= control target key end

     0   :  { %s860_s12 = smov 0   ;;  %s862_s13 = smov 0   ;;  %s1137_s0 = inlined_call_operand.vmem [shape: f32[8,1024], index: 0, kind: input, shape index: {}]   ;;  %s1138_s1 = inlined_call_operand.vmem [shape: f32[128,1024], index: 1, kind: input, shape index: {}]   ;;  %s1139_s2 = inlined_call_operand.vmem [shape: f32[1,128], index: 2, kind: input, shape index: {}]   ;;  %s1140_s3 = inlined_call_operand.vmem [shape: f32[8,128], index: 3, kind: output, shape index: {}]  }
   0x1   :  { %s864_s14 = smov 0   ;;  %s866_s15 = smov 0  }
   0x2   :  { %s868_s16 = smov 0  }
   0x3 LB: > { %s22_s17 = sadd.s32 1, %s833_s15  ;;  %p67_p1 = scmp.ne.s32.totalorder %s825_s13, %s821_s12  ;;  %s837_s16 = sphi %s868_s16, %s13_s16   ;;  %s833_s15 = sphi %s866_s15, %s1144_s15   ;;  %s829_s14 = sphi %s864_s14, %s1143_s14   ;;  %s825_s13 = sphi %s862_s13, %s1142_s13   ;;  %s821_s12 = sphi %s860_s12, %s1141_s12  }
   0x4   : > { %p23_p0 = scmp.ge.s32.totalorder %s22_s17, 2  ;;  %p68_p2 = scmp.eq.s32.totalorder %s837_s16, 0 }
   0x5   : > { %s60_s19 = sadd.s32 1, %s825_s13  ;;  %p679_p5 = scmp.ge.s32.totalorder %s837_s16, 2 }
   0x6   : > { %s1146_s17 = smov (%p23_p0, %s22_s17), 0  ;;  %p69_p3 = por %p68_p2, %p67_p1 }
   0x7   : > { %s57_s18 = ssub.s32 %s833_s15, %s1146_s17  ;;  %143 = sbr.rel (%p679_p5) target bundleno = 50 (0x32), region = 20 }
   0x8   : > { %p58_p4 = scmp.eq.s32.totalorder %s57_s18, 0 }
   0xa   : > { %s895_s20 = scalar_select %p58_p4, %s825_s13, %s60_s19  }
   0xe   : > { %159 = sbr.rel (!%p69_p3) target bundleno = 50 (0x32), region = 28  ;;  %s161_s21 = sand.u32 (%p69_p3), 1, %s825_s13  }
   0xf   : > { %s693_s22 = sshll.u32 (%p69_p3), %s833_s15, 5  ;;  %s680_s23 = sshll.u32 (%p69_p3), %s161_s21, 9 }
  0x10   : > { %s903_s26 = scalar_lea.vmem (%p69_p3), %s1138_s1, %s693_s22  ;;  %s908_s27 = scalar_lea.vmem (%p69_p3), [#allocation3], %s680_s23 }
  0x11   : > { %v179_v0 = vld [vmem:[%s903_s26] sm:$0xff] (%p69_p3)  ;;  %v181_v1 = vld [vmem:[%s903_s26 + $0x8] sm:$0xff] (%p69_p3)  ;;  %v183_v2 = vld [vmem:[%s903_s26 + $0x10] sm:$0xff] (%p69_p3) }
  0x12   : > { %180 = vst [vmem:[%s908_s27] sm:$0xff] (%p69_p3), %v179_v0  ;;  %182 = vst [vmem:[%s908_s27 + $0x8] sm:$0xff] (%p69_p3), %v181_v1  ;;  %v185_v3 = vld [vmem:[%s903_s26 + $0x18] sm:$0xff] (%p69_p3)  ;;  %v187_v4 = vld [vmem:[%s903_s26 + $0x40] sm:$0xff] (%p69_p3) }
  0x13   : > { %184 = vst [vmem:[%s908_s27 + $0x10] sm:$0xff] (%p69_p3), %v183_v2  ;;  %v189_v5 = vld [vmem:[%s903_s26 + $0x48] sm:$0xff] (%p69_p3)  ;;  %186 = vst [vmem:[%s908_s27 + $0x18] sm:$0xff] (%p69_p3), %v185_v3  ;;  %v191_v6 = vld [vmem:[%s903_s26 + $0x50] sm:$0xff] (%p69_p3) }
  0x14   : > { %188 = vst [vmem:[%s908_s27 + $0x20] sm:$0xff] (%p69_p3), %v187_v4  ;;  %190 = vst [vmem:[%s908_s27 + $0x28] sm:$0xff] (%p69_p3), %v189_v5  ;;  %v193_v7 = vld [vmem:[%s903_s26 + $0x58] sm:$0xff] (%p69_p3)  ;;  %v195_v8 = vld [vmem:[%s903_s26 + $0x80] sm:$0xff] (%p69_p3) }
  0x15   : > { %192 = vst [vmem:[%s908_s27 + $0x30] sm:$0xff] %v191_v6  ;;  %194 = vst [vmem:[%s908_s27 + $0x38] sm:$0xff] %v193_v7  ;;  %v197_v9 = vld [vmem:[%s903_s26 + $0x88] sm:$0xff]  ;;  %v199_v10 = vld [vmem:[%s903_s26 + $0x90] sm:$0xff] }
  0x16   : > { %196 = vst [vmem:[%s908_s27 + $0x40] sm:$0xff] %v195_v8  ;;  %v201_v11 = vld [vmem:[%s903_s26 + $0x98] sm:$0xff]  ;;  %198 = vst [vmem:[%s908_s27 + $0x48] sm:$0xff] %v197_v9  ;;  %v203_v12 = vld [vmem:[%s903_s26 + $0xc0] sm:$0xff] }
  0x17   : > { %200 = vst [vmem:[%s908_s27 + $0x50] sm:$0xff] %v199_v10  ;;  %202 = vst [vmem:[%s908_s27 + $0x58] sm:$0xff] %v201_v11  ;;  %v205_v13 = vld [vmem:[%s903_s26 + $0xc8] sm:$0xff]  ;;  %v207_v14 = vld [vmem:[%s903_s26 + $0xd0] sm:$0xff] }
  0x18   : > { %204 = vst [vmem:[%s908_s27 + $0x60] sm:$0xff] %v203_v12  ;;  %206 = vst [vmem:[%s908_s27 + $0x68] sm:$0xff] %v205_v13  ;;  %v209_v15 = vld [vmem:[%s903_s26 + $0xd8] sm:$0xff]  ;;  %v211_v16 = vld [vmem:[%s903_s26 + $0x100] sm:$0xff] }
  0x19   : > { %208 = vst [vmem:[%s908_s27 + $0x70] sm:$0xff] %v207_v14  ;;  %v213_v17 = vld [vmem:[%s903_s26 + $0x108] sm:$0xff]  ;;  %210 = vst [vmem:[%s908_s27 + $0x78] sm:$0xff] %v209_v15  ;;  %v215_v18 = vld [vmem:[%s903_s26 + $0x110] sm:$0xff] }
  0x1a   : > { %212 = vst [vmem:[%s908_s27 + $0x80] sm:$0xff] %v211_v16  ;;  %214 = vst [vmem:[%s908_s27 + $0x88] sm:$0xff] %v213_v17  ;;  %v217_v19 = vld [vmem:[%s903_s26 + $0x118] sm:$0xff]  ;;  %v219_v20 = vld [vmem:[%s903_s26 + $0x140] sm:$0xff] }
  0x1b   : > { %216 = vst [vmem:[%s908_s27 + $0x90] sm:$0xff] %v215_v18  ;;  %218 = vst [vmem:[%s908_s27 + $0x98] sm:$0xff] %v217_v19  ;;  %v221_v21 = vld [vmem:[%s903_s26 + $0x148] sm:$0xff]  ;;  %v223_v22 = vld [vmem:[%s903_s26 + $0x150] sm:$0xff] }
  0x1c   : > { %220 = vst [vmem:[%s908_s27 + $0xa0] sm:$0xff] %v219_v20  ;;  %v225_v23 = vld [vmem:[%s903_s26 + $0x158] sm:$0xff]  ;;  %222 = vst [vmem:[%s908_s27 + $0xa8] sm:$0xff] %v221_v21  ;;  %v227_v24 = vld [vmem:[%s903_s26 + $0x180] sm:$0xff] }
  0x1d   : > { %224 = vst [vmem:[%s908_s27 + $0xb0] sm:$0xff] %v223_v22  ;;  %226 = vst [vmem:[%s908_s27 + $0xb8] sm:$0xff] %v225_v23  ;;  %v229_v25 = vld [vmem:[%s903_s26 + $0x188] sm:$0xff]  ;;  %v231_v26 = vld [vmem:[%s903_s26 + $0x190] sm:$0xff] }
  0x1e   : > { %228 = vst [vmem:[%s908_s27 + $0xc0] sm:$0xff] %v227_v24  ;;  %230 = vst [vmem:[%s908_s27 + $0xc8] sm:$0xff] %v229_v25  ;;  %v233_v27 = vld [vmem:[%s903_s26 + $0x198] sm:$0xff]  ;;  %v235_v28 = vld [vmem:[%s903_s26 + $0x1c0] sm:$0xff] }
  0x1f   : > { %232 = vst [vmem:[%s908_s27 + $0xd0] sm:$0xff] %v231_v26  ;;  %v237_v29 = vld [vmem:[%s903_s26 + $0x1c8] sm:$0xff]  ;;  %234 = vst [vmem:[%s908_s27 + $0xd8] sm:$0xff] %v233_v27  ;;  %v239_v30 = vld [vmem:[%s903_s26 + $0x1d0] sm:$0xff] }
  0x20   : > { %236 = vst [vmem:[%s908_s27 + $0xe0] sm:$0xff] %v235_v28  ;;  %238 = vst [vmem:[%s908_s27 + $0xe8] sm:$0xff] %v237_v29  ;;  %v241_v31 = vld [vmem:[%s903_s26 + $0x1d8] sm:$0xff]  ;;  %v243_v32 = vld [vmem:[%s903_s26 + $0x200] sm:$0xff] }
  0x21   : > { %240 = vst [vmem:[%s908_s27 + $0xf0] sm:$0xff] %v239_v30  ;;  %242 = vst [vmem:[%s908_s27 + $0xf8] sm:$0xff] %v241_v31  ;;  %v245_v33 = vld [vmem:[%s903_s26 + $0x208] sm:$0xff]  ;;  %v247_v34 = vld [vmem:[%s903_s26 + $0x210] sm:$0xff] }
  0x22   : > { %244 = vst [vmem:[%s908_s27 + $0x100] sm:$0xff] %v243_v32  ;;  %v249_v35 = vld [vmem:[%s903_s26 + $0x218] sm:$0xff]  ;;  %246 = vst [vmem:[%s908_s27 + $0x108] sm:$0xff] %v245_v33  ;;  %v251_v36 = vld [vmem:[%s903_s26 + $0x240] sm:$0xff] }
  0x23   : > { %248 = vst [vmem:[%s908_s27 + $0x110] sm:$0xff] %v247_v34  ;;  %250 = vst [vmem:[%s908_s27 + $0x118] sm:$0xff] %v249_v35  ;;  %v253_v37 = vld [vmem:[%s903_s26 + $0x248] sm:$0xff]  ;;  %v255_v38 = vld [vmem:[%s903_s26 + $0x250] sm:$0xff] }
  0x24   : > { %252 = vst [vmem:[%s908_s27 + $0x120] sm:$0xff] %v251_v36  ;;  %254 = vst [vmem:[%s908_s27 + $0x128] sm:$0xff] %v253_v37  ;;  %v257_v39 = vld [vmem:[%s903_s26 + $0x258] sm:$0xff]  ;;  %v259_v40 = vld [vmem:[%s903_s26 + $0x280] sm:$0xff] }
  0x25   : > { %256 = vst [vmem:[%s908_s27 + $0x130] sm:$0xff] %v255_v38  ;;  %v261_v41 = vld [vmem:[%s903_s26 + $0x288] sm:$0xff]  ;;  %258 = vst [vmem:[%s908_s27 + $0x138] sm:$0xff] %v257_v39  ;;  %v263_v42 = vld [vmem:[%s903_s26 + $0x290] sm:$0xff] }
  0x26   : > { %260 = vst [vmem:[%s908_s27 + $0x140] sm:$0xff] %v259_v40  ;;  %262 = vst [vmem:[%s908_s27 + $0x148] sm:$0xff] %v261_v41  ;;  %v265_v43 = vld [vmem:[%s903_s26 + $0x298] sm:$0xff]  ;;  %v267_v44 = vld [vmem:[%s903_s26 + $0x2c0] sm:$0xff] }
  0x27   : > { %264 = vst [vmem:[%s908_s27 + $0x150] sm:$0xff] %v263_v42  ;;  %266 = vst [vmem:[%s908_s27 + $0x158] sm:$0xff] %v265_v43  ;;  %v269_v45 = vld [vmem:[%s903_s26 + $0x2c8] sm:$0xff]  ;;  %v271_v46 = vld [vmem:[%s903_s26 + $0x2d0] sm:$0xff] }
  0x28   : > { %268 = vst [vmem:[%s908_s27 + $0x160] sm:$0xff] %v267_v44  ;;  %v273_v47 = vld [vmem:[%s903_s26 + $0x2d8] sm:$0xff]  ;;  %270 = vst [vmem:[%s908_s27 + $0x168] sm:$0xff] %v269_v45  ;;  %v275_v48 = vld [vmem:[%s903_s26 + $0x300] sm:$0xff] }
  0x29   : > { %272 = vst [vmem:[%s908_s27 + $0x170] sm:$0xff] %v271_v46  ;;  %274 = vst [vmem:[%s908_s27 + $0x178] sm:$0xff] %v273_v47  ;;  %v277_v49 = vld [vmem:[%s903_s26 + $0x308] sm:$0xff]  ;;  %v279_v50 = vld [vmem:[%s903_s26 + $0x310] sm:$0xff] }
  0x2a   : > { %276 = vst [vmem:[%s908_s27 + $0x180] sm:$0xff] %v275_v48  ;;  %278 = vst [vmem:[%s908_s27 + $0x188] sm:$0xff] %v277_v49  ;;  %v281_v51 = vld [vmem:[%s903_s26 + $0x318] sm:$0xff]  ;;  %v283_v52 = vld [vmem:[%s903_s26 + $0x340] sm:$0xff] }
  0x2b   : > { %280 = vst [vmem:[%s908_s27 + $0x190] sm:$0xff] %v279_v50  ;;  %v285_v53 = vld [vmem:[%s903_s26 + $0x348] sm:$0xff]  ;;  %282 = vst [vmem:[%s908_s27 + $0x198] sm:$0xff] %v281_v51  ;;  %v287_v54 = vld [vmem:[%s903_s26 + $0x350] sm:$0xff] }
  0x2c   : > { %284 = vst [vmem:[%s908_s27 + $0x1a0] sm:$0xff] %v283_v52  ;;  %286 = vst [vmem:[%s908_s27 + $0x1a8] sm:$0xff] %v285_v53  ;;  %v289_v55 = vld [vmem:[%s903_s26 + $0x358] sm:$0xff]  ;;  %v291_v56 = vld [vmem:[%s903_s26 + $0x380] sm:$0xff] }
  0x2d   : > { %288 = vst [vmem:[%s908_s27 + $0x1b0] sm:$0xff] %v287_v54  ;;  %290 = vst [vmem:[%s908_s27 + $0x1b8] sm:$0xff] %v289_v55  ;;  %v293_v57 = vld [vmem:[%s903_s26 + $0x388] sm:$0xff]  ;;  %v295_v58 = vld [vmem:[%s903_s26 + $0x390] sm:$0xff] }
  0x2e   : > { %292 = vst [vmem:[%s908_s27 + $0x1c0] sm:$0xff] %v291_v56  ;;  %v297_v59 = vld [vmem:[%s903_s26 + $0x398] sm:$0xff]  ;;  %294 = vst [vmem:[%s908_s27 + $0x1c8] sm:$0xff] %v293_v57  ;;  %v299_v60 = vld [vmem:[%s903_s26 + $0x3c0] sm:$0xff] }
  0x2f   : > { %296 = vst [vmem:[%s908_s27 + $0x1d0] sm:$0xff] %v295_v58  ;;  %298 = vst [vmem:[%s908_s27 + $0x1d8] sm:$0xff] %v297_v59  ;;  %v301_v61 = vld [vmem:[%s903_s26 + $0x3c8] sm:$0xff]  ;;  %v303_v62 = vld [vmem:[%s903_s26 + $0x3d0] sm:$0xff] }
  0x30   : > { %300 = vst [vmem:[%s908_s27 + $0x1e0] sm:$0xff] %v299_v60  ;;  %302 = vst [vmem:[%s908_s27 + $0x1e8] sm:$0xff] %v301_v61  ;;  %v305_v63 = vld [vmem:[%s903_s26 + $0x3d8] sm:$0xff] }
  0x31   : > { %304 = vst [vmem:[%s908_s27 + $0x1f0] sm:$0xff] %v303_v62  ;;  %306 = vst [vmem:[%s908_s27 + $0x1f8] sm:$0xff] %v305_v63 }
  0x32 PF: > { %p683_p6 = scmp.ge.s32.totalorder %s837_s16, 1  ;;  %p311_p7 = scmp.lt.s32.totalorder %s837_s16, 3 }
  0x34   : > { %p312_p8 = pnand %p683_p6, %p311_p7 }
  0x35   : > { %s318_s28 = sand.u32 (!%p312_p8), 1, %s821_s12   ;;  %s685_s29 = sshll.u32 (!%p312_p8), %s829_s14, 2 }
  0x36   : > { %315 = sbr.rel (%p312_p8) target bundleno = 364 (0x16c), region = 51  ;;  %s684_s30 = sshll.u32 (!%p312_p8), %s318_s28, 9 }
  0x37   : > { %p352_p9 = scmp.lt.s32.totalorder (!%p312_p8), %s685_s29, 7  ;;  %s1044_s8 = scalar_lea.vmem (!%p312_p8), [#allocation3], %s684_s30 }
  0x38   : > { %p687_p10 = scmp.ne.s32.totalorder (!%p312_p8), %s829_s14, 0 }
  0x3d   : > { %s1148_s29 = smov (!%p352_p9, %s685_s29), 7  ;;  %367 = sbr.rel (%p687_p10) target bundleno = 68 (0x44), region = 59 }
  0x3e   : > { %s686_s4 = sshll.u32 %s1148_s29, 3  ;;  %v839_v0 = vmov (!%p687_p10), 0.0  }
  0x3f   : > { %s1042_s7 = scalar_lea.vmem %s1137_s0, %s686_s4  ;;  %368 = vst [vmem:[#allocation2] sm:$0xff] (!%p687_p10), %v839_v0 }
  0x44 PF: > { %v375_v1 = vld [vmem:[%s1044_s8 + $0x8] sm:$0xff]  ;;  %v377_v3 = vld [vmem:[%s1044_s8 + $0x18] sm:$0xff]  ;;  %v374_v6 = vld [vmem:[%s1044_s8] sm:$0xff]  ;;  %p688_p11 = scmp.ne.s32.totalorder %s829_s14, 1 }
  0x45   : > { %v379_v2 = vld [vmem:[%s1044_s8 + $0x28] sm:$0xff]  ;;  %v381_v5 = vld [vmem:[%s1044_s8 + $0x38] sm:$0xff]  ;;  %v378_v7 = vld [vmem:[%s1044_s8 + $0x20] sm:$0xff] }
  0x46   : > { %v694_v4 = vpack.c.bf16 %v379_v2, %v375_v1  ;;  %v726_v8 = vpack.c.bf16 %v381_v5, %v377_v3  ;;  %v696_v9 = vpack.c.bf16 %v378_v7, %v374_v6  ;;  %v376_v10 = vld [vmem:[%s1044_s8 + $0x10] sm:$0xff]  ;;  %v383_v12 = vld [vmem:[%s1044_s8 + $0x48] sm:$0xff]  ;;  %v385_v15 = vld [vmem:[%s1044_s8 + $0x58] sm:$0xff] }
  0x47   : > { %v380_v11 = vld [vmem:[%s1044_s8 + $0x30] sm:$0xff]  ;;  %v387_v14 = vld [vmem:[%s1044_s8 + $0x68] sm:$0xff]  ;;  %v389_v16 = vld [vmem:[%s1044_s8 + $0x78] sm:$0xff] }
  0x48   : > { %695 = vmatprep.subr.bf16.mxu0 %v694_v4  ;;  %v728_v13 = vpack.c.bf16 %v380_v11, %v376_v10  ;;  %727 = vmatprep.subr.bf16.mxu1 %v726_v8  ;;  %v698_v17 = vpack.c.bf16 %v387_v14, %v383_v12  ;;  %v730_v18 = vpack.c.bf16 %v389_v16, %v385_v15  ;;  %v382_v19 = vld [vmem:[%s1044_s8 + $0x40] sm:$0xff]  ;;  %v384_v21 = vld [vmem:[%s1044_s8 + $0x50] sm:$0xff]  ;;  %v391_v23 = vld [vmem:[%s1044_s8 + $0x88] sm:$0xff] }
  0x49   : > { %697 = vmatpush1.bf16.xpose.msra.mxu0 %v696_v9  ;;  %v386_v20 = vld [vmem:[%s1044_s8 + $0x60] sm:$0xff]  ;;  %v388_v22 = vld [vmem:[%s1044_s8 + $0x70] sm:$0xff]  ;;  %v395_v24 = vld [vmem:[%s1044_s8 + $0xa8] sm:$0xff] }
  0x4a   : > { %729 = vmatpush1.bf16.xpose.msra.mxu1 %v728_v13  ;;  %699 = vmatprep.subr.bf16.mxu0 %v698_v17  ;;  %v393_v25 = vld [vmem:[%s1044_s8 + $0x98] sm:$0xff]  ;;  %v700_v27 = vpack.c.bf16 %v386_v20, %v382_v19  ;;  %v732_v28 = vpack.c.bf16 %v388_v22, %v384_v21  ;;  %v702_v29 = vpack.c.bf16 %v395_v24, %v391_v23  ;;  %v390_v31 = vld [vmem:[%s1044_s8 + $0x80] sm:$0xff]  ;;  %v392_v33 = vld [vmem:[%s1044_s8 + $0x90] sm:$0xff] }
  0x4b   : > { %731 = vmatprep.subr.bf16.mxu1 %v730_v18  ;;  %v397_v26 = vld [vmem:[%s1044_s8 + $0xb8] sm:$0xff]  ;;  %v394_v32 = vld [vmem:[%s1044_s8 + $0xa0] sm:$0xff]  ;;  %v396_v34 = vld [vmem:[%s1044_s8 + $0xb0] sm:$0xff] }
  0x4c   : > { %v734_v30 = vpack.c.bf16 %v397_v26, %v393_v25  ;;  %v399_v35 = vld [vmem:[%s1044_s8 + $0xc8] sm:$0xff]  ;;  %v401_v37 = vld [vmem:[%s1044_s8 + $0xd8] sm:$0xff]  ;;  %v704_v39 = vpack.c.bf16 %v394_v32, %v390_v31  ;;  %v736_v40 = vpack.c.bf16 %v396_v34, %v392_v33  ;;  %v398_v43 = vld [vmem:[%s1044_s8 + $0xc0] sm:$0xff] }
  0x4d   : > { %v403_v36 = vld [vmem:[%s1044_s8 + $0xe8] sm:$0xff]  ;;  %v405_v38 = vld [vmem:[%s1044_s8 + $0xf8] sm:$0xff]  ;;  %v402_v44 = vld [vmem:[%s1044_s8 + $0xe0] sm:$0xff] }
  0x4e   : > { %v706_v41 = vpack.c.bf16 %v403_v36, %v399_v35  ;;  %v738_v42 = vpack.c.bf16 %v405_v38, %v401_v37  ;;  %v400_v45 = vld [vmem:[%s1044_s8 + $0xd0] sm:$0xff]  ;;  %v371_v46 = vld [vmem:[%s1042_s7 + $0x8] sm:$0xff]  ;;  %v407_v49 = vld [vmem:[%s1044_s8 + $0x108] sm:$0xff]  ;;  %v708_v53 = vpack.c.bf16 %v402_v44, %v398_v43 }
  0x4f   : > { %v373_v47 = vld [vmem:[%s1042_s7 + $0x18] sm:$0xff]  ;;  %v411_v50 = vld [vmem:[%s1044_s8 + $0x128] sm:$0xff]  ;;  %502 = vmatprep.mubr.f32.mxu0 %v371_v46  ;;  %v409_v51 = vld [vmem:[%s1044_s8 + $0x118] sm:$0xff] }
  0x50   : > { %v404_v48 = vld [vmem:[%s1044_s8 + $0xf0] sm:$0xff]  ;;  %v413_v52 = vld [vmem:[%s1044_s8 + $0x138] sm:$0xff]  ;;  %572 = vmatprep.mubr.f32.mxu1 %v373_v47  ;;  %v710_v55 = vpack.c.bf16 %v411_v50, %v407_v49  ;;  %v406_v57 = vld [vmem:[%s1044_s8 + $0x100] sm:$0xff] }
  0x51   : > { %701 = vmatpush1.bf16.xpose.msra.mxu0 %v700_v27  ;;  %v740_v54 = vpack.c.bf16 %v404_v48, %v400_v45  ;;  %v742_v56 = vpack.c.bf16 %v413_v52, %v409_v51  ;;  %v410_v58 = vld [vmem:[%s1044_s8 + $0x120] sm:$0xff]  ;;  %v408_v59 = vld [vmem:[%s1044_s8 + $0x110] sm:$0xff]  ;;  %v415_v61 = vld [vmem:[%s1044_s8 + $0x148] sm:$0xff] }
  0x52   : > { %733 = vmatpush1.bf16.xpose.msra.mxu1 %v732_v28  ;;  %703 = vmatprep.subr.bf16.mxu0 %v702_v29  ;;  %v412_v60 = vld [vmem:[%s1044_s8 + $0x130] sm:$0xff]  ;;  %v419_v62 = vld [vmem:[%s1044_s8 + $0x168] sm:$0xff]  ;;  %v417_v63 = vld [vmem:[%s1044_s8 + $0x158] sm:$0xff]  ;;  %v712_v1 = vpack.c.bf16 %v410_v58, %v406_v57 }
  0x53   : > { %735 = vmatprep.subr.bf16.mxu1 %v734_v30  ;;  %v421_v0 = vld [vmem:[%s1044_s8 + $0x178] sm:$0xff]  ;;  %v744_v2 = vpack.c.bf16 %v412_v60, %v408_v59  ;;  %v714_v3 = vpack.c.bf16 %v419_v62, %v415_v61  ;;  %v414_v5 = vld [vmem:[%s1044_s8 + $0x140] sm:$0xff]  ;;  %v416_v7 = vld [vmem:[%s1044_s8 + $0x150] sm:$0xff] }
  0x54   : > { %v746_v4 = vpack.c.bf16 %v421_v0, %v417_v63  ;;  %v418_v6 = vld [vmem:[%s1044_s8 + $0x160] sm:$0xff]  ;;  %v420_v8 = vld [vmem:[%s1044_s8 + $0x170] sm:$0xff]  ;;  %v423_v9 = vld [vmem:[%s1044_s8 + $0x188] sm:$0xff] }
  0x55   : > { %v427_v10 = vld [vmem:[%s1044_s8 + $0x1a8] sm:$0xff]  ;;  %v425_v11 = vld [vmem:[%s1044_s8 + $0x198] sm:$0xff]  ;;  %v716_v13 = vpack.c.bf16 %v418_v6, %v414_v5  ;;  %v748_v14 = vpack.c.bf16 %v420_v8, %v416_v7  ;;  %v422_v17 = vld [vmem:[%s1044_s8 + $0x180] sm:$0xff] }
  0x56   : > { %v429_v12 = vld [vmem:[%s1044_s8 + $0x1b8] sm:$0xff]  ;;  %v718_v15 = vpack.c.bf16 %v427_v10, %v423_v9  ;;  %v426_v18 = vld [vmem:[%s1044_s8 + $0x1a0] sm:$0xff]  ;;  %v424_v19 = vld [vmem:[%s1044_s8 + $0x190] sm:$0xff] }
  0x57   : > { %v750_v16 = vpack.c.bf16 %v429_v12, %v425_v11  ;;  %v428_v20 = vld [vmem:[%s1044_s8 + $0x1b0] sm:$0xff]  ;;  %v431_v21 = vld [vmem:[%s1044_s8 + $0x1c8] sm:$0xff]  ;;  %v433_v23 = vld [vmem:[%s1044_s8 + $0x1d8] sm:$0xff]  ;;  %v720_v25 = vpack.c.bf16 %v426_v18, %v422_v17 }
  0x58   : > { %v435_v22 = vld [vmem:[%s1044_s8 + $0x1e8] sm:$0xff]  ;;  %v437_v24 = vld [vmem:[%s1044_s8 + $0x1f8] sm:$0xff]  ;;  %v752_v26 = vpack.c.bf16 %v428_v20, %v424_v19  ;;  %v430_v29 = vld [vmem:[%s1044_s8 + $0x1c0] sm:$0xff] }
  0x59   : > { %705 = vmatpush1.bf16.xpose.msra.mxu0 %v704_v39  ;;  %v722_v27 = vpack.c.bf16 %v435_v22, %v431_v21  ;;  %v754_v28 = vpack.c.bf16 %v437_v24, %v433_v23  ;;  %v434_v30 = vld [vmem:[%s1044_s8 + $0x1e0] sm:$0xff]  ;;  %v432_v31 = vld [vmem:[%s1044_s8 + $0x1d0] sm:$0xff]  ;;  %v370_v35 = vld [vmem:[%s1042_s7] sm:$0xff] }
  0x5a   : > { %737 = vmatpush1.bf16.xpose.msra.mxu1 %v736_v40  ;;  %707 = vmatprep.subr.bf16.mxu0 %v706_v41  ;;  %v436_v32 = vld [vmem:[%s1044_s8 + $0x1f0] sm:$0xff]  ;;  %v724_v33 = vpack.c.bf16 %v434_v30, %v430_v29  ;;  %v372_v36 = vld [vmem:[%s1042_s7 + $0x10] sm:$0xff]  ;;  %v369_v38 = vld [vmem:[#allocation2] sm:$0xff] }
  0x5b   : > { %739 = vmatprep.subr.bf16.mxu1 %v738_v42  ;;  %v756_v34 = vpack.c.bf16 %v436_v32, %v432_v31  ;;  %v689_v45 = vld [vmem:[%s1139_s2] ss:$0 sm:$0xff] (!%p688_p11) }
  0x61   : > { %709 = vmatpush1.bf16.xpose.msra.mxu0 %v708_v53 }
  0x62   : > { %741 = vmatpush1.bf16.xpose.msra.mxu1 %v740_v54  ;;  %711 = vmatprep.subr.bf16.mxu0 %v710_v55 }
  0x63   : > { %743 = vmatprep.subr.bf16.mxu1 %v742_v56 }
  0x69   : > { %713 = vmatpush1.bf16.xpose.msra.mxu0 %v712_v1 }
  0x6a   : > { %745 = vmatpush1.bf16.xpose.msra.mxu1 %v744_v2  ;;  %715 = vmatprep.subr.bf16.mxu0 %v714_v3 }
  0x6b   : > { %747 = vmatprep.subr.bf16.mxu1 %v746_v4 }
  0x71   : > { %717 = vmatpush1.bf16.xpose.msra.mxu0 %v716_v13 }
  0x72   : > { %749 = vmatpush1.bf16.xpose.msra.mxu1 %v748_v14  ;;  %719 = vmatprep.subr.bf16.mxu0 %v718_v15 }
  0x73   : > { %751 = vmatprep.subr.bf16.mxu1 %v750_v16 }
  0x79   : > { %721 = vmatpush1.bf16.xpose.msra.mxu0 %v720_v25 }
  0x7a   : > { %753 = vmatpush1.bf16.xpose.msra.mxu1 %v752_v26  ;;  %723 = vmatprep.subr.bf16.mxu0 %v722_v27 }
  0x7b   : > { %755 = vmatprep.subr.bf16.mxu1 %v754_v28 }
  0x81   : > { %725 = vmatpush1.bf16.xpose.msra.mxu0 %v724_v33 }
  0x82   : > { %757 = vmatpush1.bf16.xpose.msra.mxu1 %v756_v34 }
  0x88   : > { %503 = vmatmul.mubr.f32.vlgmr.msra.gmra.mrb[0].mxu0 %v370_v35 }
  0x89   : > { %573 = vmatmul.mubr.f32.vlgmr.msra.gmra.mrb[0].mxu1 %v372_v36 }
 0x15b   : > { %v504_v37 = vpop.f32.mrb[0].mxu0  ;;  %583 = sbr.rel (%p688_p11) target bundleno = 364 (0x16c), region = 63 }
 0x15c   : > { %v574_v39 = vpop.f32.mrb[0].mxu1  ;;  %v506_v40 = vpop.f32.mrb[1].mxu0 }
 0x15d   : > { %v575_v41 = vadd.f32 %v574_v39, %v504_v37  ;;  %v576_v42 = vpop.f32.mrb[1].mxu1 }
 0x15f   : > { %v578_v43 = vadd.f32 %v575_v41, %v369_v38 }
 0x161   : > { %579 = vst [vmem:[#allocation2] sm:$0xff] %v578_v43 }
 0x168   : > { %v584_v44 = vld [vmem:[#allocation2] sm:$0xff] }
 0x169   : > { %v592_v46 = vadd.f32 %v689_v45, %v584_v44 }
 0x16b   : > { %593 = vst [vmem:[%s1140_s3] sm:$0xff] %v592_v46 }
 0x16c PF: > { %s13_s16 = sadd.s32 1, %s837_s16   ;;  %s1141_s12 = smov %s825_s13 }
 0x16d   : > { %p10_p12 = scmp.ge.s32.totalorder %s13_s16, 4   ;;  %s1142_s13 = smov %s895_s20 }
 0x16e   : > { %s1143_s14 = smov %s833_s15  ;;  %s1144_s15 = smov %s1146_s17 }
 0x16f   :  { %12 = sbr.rel (!%p10_p12) target bundleno = 3 (0x3), region = 101 }

</bundles_post_ra>
